<compile_context>
chip_gen: v7x
topology: tpu7x:2x2x1
jax: 0.10.0
libtpu: 0.0.40
codegen_flags: <defaults>
</compile_context>

<pallas_src>
import functools
import math

import jax
import jax.numpy as jnp
from jax.experimental import pallas as pl
from jax.experimental.pallas import tpu as pltpu


def _round_up(x, m):
    return ((x + m - 1) // m) * m


def _temp_scale_kernel(x_ref, w_ref, b_ref, it_ref, o_ref, acc_ref, *, compute_dtype):
    # grid = (batch tiles, K tiles); K is the reduction (last, "arbitrary") axis.
    k = pl.program_id(1)

    @pl.when(k == 0)
    def _():
        acc_ref[...] = jnp.zeros_like(acc_ref)

    # In-kernel cast of the streamed x tile to the MXU compute dtype; W is
    # already bf16.  Accumulate in f32 on the MXU.
    acc_ref[...] += jnp.dot(
        x_ref[...].astype(compute_dtype),
        w_ref[...],
        preferred_element_type=jnp.float32,
    )

    @pl.when(k == pl.num_programs(1) - 1)
    def _():
        # Epilogue: bias add + exact (precomputed) 1/|temperature| scaling.
        o_ref[...] = ((acc_ref[...] + b_ref[...]) * it_ref[...]).astype(o_ref.dtype)


def model_with_temperature_forward(
    x_nchw,
    w,
    b,
    temperature,
    *,
    block_m=1024,
    block_k=1024,
    compute_dtype=jnp.bfloat16,
    out_dtype=jnp.float32,
):
    """x_nchw: (B, C, H, W); w: (D, L); b: (L,); temperature: (L,)."""
    B = x_nchw.shape[0]
    D = math.prod(x_nchw.shape[1:])
    Dw, L = w.shape
    assert Dw == D, (Dw, D)

    # ---- wrapper-side layout plumbing (cheap; x itself is NOT copied) ------
    x2 = x_nchw.reshape(B, D)            # NCHW row-major flatten (view-like)
    if D % 128 == 0:
        Dp = D                           # lane-aligned — no pad, no copy of x
    else:
        Dp = _round_up(D, 128)           # fallback: one pad copy of x
        x2 = jnp.pad(x2, ((0, 0), (0, Dp - D)))

    Lp = _round_up(max(L, 128), 128)     # lane-dense label dim (unmasked vst)

    # Small one-time transforms on weights / bias / temperature.
    w_p = jnp.pad(w.astype(compute_dtype), ((0, Dp - D), (0, Lp - L)))
    b_p = jnp.pad(b.astype(jnp.float32), (0, Lp - L)).reshape(1, Lp)
    inv_t = 1.0 / jnp.abs(temperature.astype(jnp.float32))   # exact, host/XLA side
    it_p = jnp.pad(inv_t, (0, Lp - L), constant_values=1.0).reshape(1, Lp)

    # Batch tile: multiple of 16 (bf16 sublane packing); aim for >= 4 batch
    # tiles at moderate B so v7x's second TC and the DMA pipeline are used.
    TM = int(min(block_m, max(16, _round_up(pl.cdiv(B, 4), 16))))
    grid_m = pl.cdiv(B, TM)              # ragged edge block masked by Pallas

    # K tile: largest multiple of 128 <= block_k that divides Dp exactly, so
    # no out-of-bounds garbage ever enters the accumulator.
    nk = Dp // 128
    c_max = max(1, min(nk, block_k // 128))
    tk = 128
    for c in range(c_max, 0, -1):
        if nk % c == 0:
            tk = 128 * c
            break
    grid_k = Dp // tk

    # Per-step VMEM footprint (double-buffered streams + resident scratch).
    x_bpe = jnp.dtype(x2.dtype).itemsize
    w_bpe = jnp.dtype(compute_dtype).itemsize
    o_bpe = jnp.dtype(out_dtype).itemsize
    vmem_bytes = (
        2 * TM * tk * x_bpe      # x tiles (double buffered, native dtype)
        + 2 * tk * Lp * w_bpe    # W tiles (double buffered)
        + 2 * TM * Lp * o_bpe    # output tiles (double buffered)
        + TM * Lp * 4            # f32 accumulator scratch
        + 4 * Lp * 4             # bias / inv-temperature rows
    )
    # Leave headroom under v7x's 64 MiB per-TC VMEM: cap at 48 MiB.
    vmem_limit = int(min(max(2 * vmem_bytes, 32 * 1024 * 1024), 48 * 1024 * 1024))

    kernel = functools.partial(_temp_scale_kernel, compute_dtype=compute_dtype)

    out_p = pl.pallas_call(
        kernel,
        out_shape=jax.ShapeDtypeStruct((B, Lp), out_dtype),
        grid_spec=pltpu.PrefetchScalarGridSpec(
            num_scalar_prefetch=0,
            grid=(grid_m, grid_k),
            in_specs=[
                pl.BlockSpec((TM, tk), lambda i, k: (i, k)),   # x: streamed (B, K)
                pl.BlockSpec((tk, Lp), lambda i, k: (k, 0)),   # W: streamed over K
                pl.BlockSpec((1, Lp), lambda i, k: (0, 0)),    # bias: resident
                pl.BlockSpec((1, Lp), lambda i, k: (0, 0)),    # 1/|t|: resident
            ],
            out_specs=pl.BlockSpec((TM, Lp), lambda i, k: (i, 0)),
            scratch_shapes=[pltpu.VMEM((TM, Lp), jnp.float32)],
        ),
        compiler_params=pltpu.CompilerParams(
            dimension_semantics=("parallel", "arbitrary"),
            vmem_limit_bytes=vmem_limit,
        ),
    )(x2, w_p, b_p, it_p)

    return out_p[:, :L]


if __name__ == "__main__":
    # Small deterministic setup: batch=2, channels=4, spatial=16, num_labels=8.
    B, C, H, W = 2, 4, 16, 16
    num_labels = 8
    D = C * H * W

    key = jax.random.PRNGKey(0)
    kx, kw, kb = jax.random.split(key, 3)

    x = jax.random.normal(kx, (B, C, H, W), dtype=jnp.float32)
    # Synthetic wrapped model: Linear(D -> num_labels), deterministic init.
    w = jax.random.normal(kw, (D, num_labels), dtype=jnp.float32) * 0.02
    b = jax.random.normal(kb, (num_labels,), dtype=jnp.float32) * 0.01
    # nn.Parameter(torch.ones(num_labels) * 0.2)
    temperature = jnp.ones((num_labels,), dtype=jnp.float32) * 0.2

    out = model_with_temperature_forward(x, w, b, temperature)
    out = jax.block_until_ready(out)

    # Reference in plain JAX (same semantics as the PyTorch module), computed
    # with the same bf16 rounding of x/W the kernel applies (f32 accumulate),
    # and exact division by |temperature| (matches the exact wrapper 1/|t|).
    x_bf = x.reshape(B, D).astype(jnp.bfloat16).astype(jnp.float32)
    w_bf = w.astype(jnp.bfloat16).astype(jnp.float32)
    logits_ref = jnp.dot(x_bf, w_bf, precision=jax.lax.Precision.HIGHEST) + b
    ref = logits_ref / jnp.abs(temperature)[None, :]

    assert out.shape == (B, num_labels)
    max_err = jnp.max(jnp.abs(out - ref))
    assert jnp.allclose(out, ref, atol=1e-2, rtol=1e-2), max_err

    print("KERNEL_OK")
</pallas_src>

<mosaic_0001>
module attributes {stable_mosaic.version = 11 : i64} {
  func.func @_temp_scale_kernel(%arg0: i32, %arg1: i32, %arg2: memref<16x1024xf32, #tpu.memory_space<vmem>>, %arg3: memref<1024x128xbf16, #tpu.memory_space<vmem>>, %arg4: memref<1x128xf32, #tpu.memory_space<vmem>>, %arg5: memref<1x128xf32, #tpu.memory_space<vmem>>, %arg6: memref<16x128xf32, #tpu.memory_space<vmem>>, %arg7: memref<16x128xf32, #tpu.memory_space<vmem>>) attributes {dimension_semantics = [#tpu.dimension_semantics<parallel>, #tpu.dimension_semantics<arbitrary>], iteration_bounds = array<i64: 1, 1>, scalar_prefetch = 0 : i64, scratch_operands = 1 : i64, tpu.core_type = #tpu.core_type<tc>, window_params = [{transform_indices = @transform_0, window_bounds = array<i64: 16, 1024>}, {transform_indices = @transform_1, window_bounds = array<i64: 1024, 128>}, {pipeline_mode = #tpu.pipeline_mode<synchronous>, transform_indices = @transform_2, window_bounds = array<i64: 1, 128>}, {pipeline_mode = #tpu.pipeline_mode<synchronous>, transform_indices = @transform_3, window_bounds = array<i64: 1, 128>}, {transform_indices = @transform_4, window_bounds = array<i64: 16, 128>}]} {
    %c0_i32 = arith.constant 0 : i32
    %0 = arith.cmpi eq, %arg1, %c0_i32 : i32
    %1 = arith.extui %0 : i1 to i32
    %c0_i32_0 = arith.constant 0 : i32
    %2 = arith.cmpi ne, %1, %c0_i32_0 : i32
    scf.if %2 {
      %cst_10 = arith.constant 0.000000e+00 : f32
      %13 = vector.broadcast %cst_10 : f32 to vector<16x128xf32>
      %c0_11 = arith.constant 0 : index
      %c0_12 = arith.constant 0 : index
      %14 = vector.load %arg7[%c0_11, %c0_12] : memref<16x128xf32, #tpu.memory_space<vmem>>, vector<16x128xf32>
      tpu.vector_store %arg7[%c0_11, %c0_12], %13 {strides = array<i32>} : memref<16x128xf32, #tpu.memory_space<vmem>>, vector<16x128xf32>,
    } else {
    }
    %c0 = arith.constant 0 : index
    %c0_1 = arith.constant 0 : index
    %3 = vector.load %arg7[%c0, %c0_1] : memref<16x128xf32, #tpu.memory_space<vmem>>, vector<16x128xf32>
    %c0_2 = arith.constant 0 : index
    %c0_3 = arith.constant 0 : index
    %4 = vector.load %arg2[%c0_2, %c0_3] : memref<16x1024xf32, #tpu.memory_space<vmem>>, vector<16x1024xf32>
    %5 = arith.truncf %4 : vector<16x1024xf32> to vector<16x1024xbf16>
    %c0_4 = arith.constant 0 : index
    %c0_5 = arith.constant 0 : index
    %6 = vector.load %arg3[%c0_4, %c0_5] : memref<1024x128xbf16, #tpu.memory_space<vmem>>, vector<1024x128xbf16>
    %cst = arith.constant dense<0.000000e+00> : vector<16x128xf32>
    %7 = tpu.matmul %5, %6, %cst {dimension_numbers = #tpu.dot_dimension_numbers<[1], [0], [0], [1], [0, 0, 1, 1], [], []>} : vector<16x1024xbf16>, vector<1024x128xbf16>, vector<16x128xf32> -> vector<16x128xf32>
    %8 = arith.addf %3, %7 : vector<16x128xf32>
    %c0_6 = arith.constant 0 : index
    %c0_7 = arith.constant 0 : index
    %9 = vector.load %arg7[%c0_6, %c0_7] : memref<16x128xf32, #tpu.memory_space<vmem>>, vector<16x128xf32>
    tpu.vector_store %arg7[%c0_6, %c0_7], %8 {strides = array<i32>} : memref<16x128xf32, #tpu.memory_space<vmem>>, vector<16x128xf32>,
    %c0_i32_8 = arith.constant 0 : i32
    %10 = arith.cmpi eq, %arg1, %c0_i32_8 : i32
    %11 = arith.extui %10 : i1 to i32
    %c0_i32_9 = arith.constant 0 : i32
    %12 = arith.cmpi ne, %11, %c0_i32_9 : i32
    scf.if %12 {
      %c0_10 = arith.constant 0 : index
      %c0_11 = arith.constant 0 : index
      %13 = vector.load %arg7[%c0_10, %c0_11] : memref<16x128xf32, #tpu.memory_space<vmem>>, vector<16x128xf32>
      %c0_12 = arith.constant 0 : index
      %c0_13 = arith.constant 0 : index
      %14 = vector.load %arg4[%c0_12, %c0_13] : memref<1x128xf32, #tpu.memory_space<vmem>>, vector<1x128xf32>
      %15 = vector.broadcast %14 : vector<1x128xf32> to vector<16x128xf32>
      %16 = arith.addf %13, %15 : vector<16x128xf32>
      %c0_14 = arith.constant 0 : index
      %c0_15 = arith.constant 0 : index
      %17 = vector.load %arg5[%c0_14, %c0_15] : memref<1x128xf32, #tpu.memory_space<vmem>>, vector<1x128xf32>
      %18 = vector.broadcast %17 : vector<1x128xf32> to vector<16x128xf32>
      %19 = arith.mulf %16, %18 : vector<16x128xf32>
      %c0_16 = arith.constant 0 : index
      %c0_17 = arith.constant 0 : index
      %20 = vector.load %arg6[%c0_16, %c0_17] : memref<16x128xf32, #tpu.memory_space<vmem>>, vector<16x128xf32>
      tpu.vector_store %arg6[%c0_16, %c0_17], %19 {strides = array<i32>} : memref<16x128xf32, #tpu.memory_space<vmem>>, vector<16x128xf32>,
    } else {
    }
    return
  }
  func.func @transform_0(%arg0: i32, %arg1: i32) -> (i32, i32) {
    %c0_i32 = arith.constant 0 : i32
    return %arg0, %arg1 : i32, i32
  }
  func.func @transform_1(%arg0: i32, %arg1: i32) -> (i32, i32) {
    %c0_i32 = arith.constant 0 : i32
    %c0_i32_0 = arith.constant 0 : i32
    return %arg1, %c0_i32 : i32, i32
  }
  func.func @transform_2(%arg0: i32, %arg1: i32) -> (i32, i32) {
    %c0_i32 = arith.constant 0 : i32
    %c0_i32_0 = arith.constant 0 : i32
    %c0_i32_1 = arith.constant 0 : i32
    return %c0_i32, %c0_i32_0 : i32, i32
  }
  func.func @transform_3(%arg0: i32, %arg1: i32) -> (i32, i32) {
    %c0_i32 = arith.constant 0 : i32
    %c0_i32_0 = arith.constant 0 : i32
    %c0_i32_1 = arith.constant 0 : i32
    return %c0_i32, %c0_i32_0 : i32, i32
  }
  func.func @transform_4(%arg0: i32, %arg1: i32) -> (i32, i32) {
    %c0_i32 = arith.constant 0 : i32
    %c0_i32_0 = arith.constant 0 : i32
    return %arg0, %c0_i32 : i32, i32
  }
}

</mosaic_0001>

<bundles_post_ra>
// kernel: tpu_custom_call.1
= control target key start
LH: loop header
LB: loop body
LE: loop exit
PB: predicated region body
PF: predicated region fallthrough
CT: control target
= control target key end

     0   :  { %9 = vsyncpa [#allocation4], 0  ;;  %s1397_s0 = inlined_call_operand.hbm [shape: f32[2,1024], index: 0, kind: input, shape index: {}]   ;;  %s1398_s1 = inlined_call_operand.hbm [shape: bf16[1024,128], index: 1, kind: input, shape index: {}]   ;;  %s1399_s2 = inlined_call_operand.vmem [shape: f32[1,128], index: 2, kind: input, shape index: {}]   ;;  %s1400_s3 = inlined_call_operand.vmem [shape: f32[1,128], index: 3, kind: input, shape index: {}]   ;;  %s1401_s4 = inlined_call_operand.hbm [shape: f32[2,128], index: 4, kind: output, shape index: {}]  }
   0x1   :  { %10 = vsyncpa [#allocation7], 0 }
   0x2   :  { %11 = vsyncpa [#allocation5], 0 }
   0x3   :  { %16 = vsyncadd [#allocation4], 1792  ;;  %s1302_s15 = smov [#allocation3]   ;;  %s1230_s19 = scalar_lea.hbm %s1397_s0, 256 }
   0x4   :  { %s17_s16 = sshll.u32 %s1302_s15, 4  ;;  %p1231_p0 = scmp.ne.s32.totalorder %s1397_s0, %s1230_s19  ;;  %s18_s16 = int_to_ptr.vmem [resolvable:$true] %s17_s16 }
   0x5   :  { %p1234_p1 = scmp.lt.u32.totalorder %s1230_s19, %s1397_s0 }
   0x7   :  { %p1236_p2 = pnand %p1234_p1, %p1231_p0 }
   0x9   :  { %1239 = shalt.err (!%p1236_p2)
}
   0xa   :  { %s1240_s24 = scalar_lea.vmem %s18_s16, 256  ;;  %s1244_s25 = scalar_lea.vmem %s18_s16, 2048 }
   0xb   :  { %p1241_p3 = scmp.ne.s32.totalorder %s18_s16, %s1240_s24  ;;  %p1245_p4 = scmp.lt.s32.totalorder %s18_s16, %s18_s16 }
   0xc   :  { %p1246_p5 = scmp.lt.s32.totalorder %s1244_s25, %s1240_s24 }
   0xe   :  { %p1247_p6 = por %p1246_p5, %p1245_p4 }
  0x10   :  { %p1248_p7 = pnand %p1247_p6, %p1241_p3 }
  0x12   :  { %1251 = shalt.err (!%p1248_p7)
}
  0x13   :  { %s1303_s26 = smov 256   ;;  %s1304_s27 = smov 16  }
  0x14   :  { %23 = dma.hbm_to_vmem [thread:$0]  %s1397_s0, 256, %s18_s16, [#allocation4], %s1303_s26, %s1303_s26, %s1304_s27  }
  0x15   :  { %s1305_s30 = smov [#allocation6]   ;;  %s1252_s8 = scalar_lea.hbm %s1398_s1, 8192 }
  0x16   :  { %s29_s5 = sshll.u32 %s1305_s30, 4  ;;  %p1253_p8 = scmp.ne.s32.totalorder %s1398_s1, %s1252_s8  ;;  %s30_s5 = int_to_ptr.vmem [resolvable:$true] %s29_s5 }
  0x17   :  { %p1256_p9 = scmp.lt.u32.totalorder %s1252_s8, %s1398_s1 }
  0x19   :  { %p1258_p10 = pnand %p1256_p9, %p1253_p8 }
  0x1b   :  { %1261 = shalt.err (!%p1258_p10)
}
  0x1c   :  { %s1262_s13 = scalar_lea.vmem %s30_s5, 8192  ;;  %p1267_p12 = scmp.lt.s32.totalorder %s30_s5, %s30_s5 }
  0x1d   :  { %p1263_p11 = scmp.ne.s32.totalorder %s30_s5, %s1262_s13  ;;  %p1268_p13 = scmp.lt.s32.totalorder %s1262_s13, %s1262_s13 }
  0x1f   :  { %p1269_p0 = por %p1268_p13, %p1267_p12 }
  0x21   :  { %p1270_p1 = pnand %p1269_p0, %p1263_p11 }
  0x23   :  { %1273 = shalt.err (!%p1270_p1)
}
  0x24   :  { %s1306_s0 = smov 64   ;;  %s1307_s14 = smov 4  }
  0x25   :  { %35 = dma.hbm_to_vmem [thread:$0]  %s1398_s1, 8192, %s30_s5, [#allocation7], %s1306_s0, %s1306_s0, %s1307_s14  }
  0x26   :  { %1296 = dma.done.wait [#allocation4], 2048  }
  0x27   :  { %1297 = vsyncadd [#allocation4], 4294965248 }
  0x28   :  { %1298 = dma.done.wait [#allocation7], 8192  }
  0x29   :  { %1299 = vsyncadd [#allocation7], 4294959104  ;;  %v1142_v0 = vld [vmem:[#allocation6 + $0x40] sm:$0xff]   ;;  %v1146_v4 = vld [vmem:[#allocation6 + $0x48] sm:$0xff]   ;;  %v1308_v25 = vmov 1983009808   ;;  %v94_v27 = vlaneseq }
  0x2a   :  { %v1143_v1 = vld [vmem:[#allocation6 + $0xc0] sm:$0xff]   ;;  %1044 = vmatprep.subr.bf16.mxu0 %v1142_v0  ;;  %v1147_v5 = vld [vmem:[#allocation6 + $0xc8] sm:$0xff]   ;;  %v1150_v8 = vld [vmem:[#allocation6 + $0x50] sm:$0xff]   ;;  %v92_v26 = vunpack.c.l.s4 %v1308_v25 }
  0x2b   :  { %v1144_v2 = vld [vmem:[#allocation6] sm:$0xff]   ;;  %1066 = vmatprep.subr.bf16.mxu1 %v1143_v1  ;;  %v1148_v6 = vld [vmem:[#allocation6 + $0x8] sm:$0xff]   ;;  %v1151_v9 = vld [vmem:[#allocation6 + $0xd0] sm:$0xff]   ;;  %v95_v33 = vshrl.u32 %v94_v27, 7 }
  0x2c   :  { %v1145_v3 = vld [vmem:[#allocation6 + $0x80] sm:$0xff]   ;;  %1045 = vmatpush3.bf16.msra.mxu0 %v1144_v2  ;;  %v1149_v7 = vld [vmem:[#allocation6 + $0x88] sm:$0xff]   ;;  %v1152_v10 = vld [vmem:[#allocation6 + $0x10] sm:$0xff]   ;;  %v93_v32 = vunpack.c.0.s8 %v92_v26 }
  0x2d   :  { %1067 = vmatpush3.bf16.msra.mxu1 %v1145_v3  ;;  %1046 = vmatprep.subr.bf16.mxu0 %v1146_v4  ;;  %v1153_v11 = vld [vmem:[#allocation6 + $0x90] sm:$0xff]   ;;  %v1154_v12 = vld [vmem:[#allocation6 + $0x58] sm:$0xff]   ;;  %v1158_v16 = vld [vmem:[#allocation6 + $0x60] sm:$0xff]  }
  0x2e   :  { %1068 = vmatprep.subr.bf16.mxu1 %v1147_v5  ;;  %v1155_v13 = vld [vmem:[#allocation6 + $0xd8] sm:$0xff]   ;;  %v1159_v17 = vld [vmem:[#allocation6 + $0xe0] sm:$0xff]   ;;  %v1162_v20 = vld [vmem:[#allocation6 + $0x68] sm:$0xff]   ;;  %v1361_v37 = vsub.s32 %v93_v32, %v95_v33 }
  0x2f   :  { %v1156_v14 = vld [vmem:[#allocation6 + $0x18] sm:$0xff]   ;;  %v1160_v18 = vld [vmem:[#allocation6 + $0x20] sm:$0xff]   ;;  %v1163_v21 = vld [vmem:[#allocation6 + $0xe8] sm:$0xff]  }
  0x30   :  { %1047 = vmatpush3.bf16.msra.mxu0 %v1148_v6  ;;  %v1157_v15 = vld [vmem:[#allocation6 + $0x98] sm:$0xff]   ;;  %v1161_v19 = vld [vmem:[#allocation6 + $0xa0] sm:$0xff]   ;;  %v1164_v22 = vld [vmem:[#allocation6 + $0x28] sm:$0xff]  }
  0x31   :  { %1069 = vmatpush3.bf16.msra.mxu1 %v1149_v7  ;;  %1048 = vmatprep.subr.bf16.mxu0 %v1150_v8  ;;  %v1165_v23 = vld [vmem:[#allocation6 + $0xa8] sm:$0xff]   ;;  %v1166_v24 = vld [vmem:[#allocation6 + $0x70] sm:$0xff]   ;;  %v1170_v31 = vld [vmem:[#allocation6 + $0x78] sm:$0xff]  }
  0x32   :  { %1070 = vmatprep.subr.bf16.mxu1 %v1151_v9  ;;  %v1167_v28 = vld [vmem:[#allocation6 + $0xf0] sm:$0xff]   ;;  %v1171_v34 = vld [vmem:[#allocation6 + $0xf8] sm:$0xff]   ;;  %v1186_v53 = vld [vmem:[#allocation6 + $0x140] sm:$0xff]  }
  0x33   :  { %v1168_v29 = vld [vmem:[#allocation6 + $0x30] sm:$0xff]   ;;  %v1172_v35 = vld [vmem:[#allocation6 + $0x38] sm:$0xff]   ;;  %v1187_v58 = vld [vmem:[#allocation6 + $0x1c0] sm:$0xff]  }
  0x34   :  { %1049 = vmatpush3.bf16.msra.mxu0 %v1152_v10  ;;  %v1169_v30 = vld [vmem:[#allocation6 + $0xb0] sm:$0xff]   ;;  %v1173_v36 = vld [vmem:[#allocation6 + $0xb8] sm:$0xff]   ;;  %v1188_v62 = vld [vmem:[#allocation6 + $0x100] sm:$0xff]  }
  0x35   :  { %1071 = vmatpush3.bf16.msra.mxu1 %v1153_v11  ;;  %1050 = vmatprep.subr.bf16.mxu0 %v1154_v12  ;;  %v1174_v38 = vld [vmem:[#allocation3] ss:$16 sps:$4 sm:$0xff]   ;;  %v1182_v43 = vld [vmem:[#allocation3 + $0x4] ss:$16 sps:$4 sm:$0xff]   ;;  %v1190_v4 = vld [vmem:[#allocation6 + $0x148] sm:$0xff]  }
  0x36   :  { %1072 = vmatprep.subr.bf16.mxu1 %v1155_v13  ;;  %v1176_v39 = vld [vmem:[#allocation3 + $0x20] ss:$16 sps:$4 sm:$0xff]   ;;  %v97_v42 = vrot.slane %v1174_v38, %v1361_v37  ;;  %v1183_v44 = vld [vmem:[#allocation3 + $0x24] ss:$16 sps:$4 sm:$0xff]   ;;  %v104_v50 = vrot.slane %v1182_v43, %v1361_v37  ;;  %v1191_v7 = vld [vmem:[#allocation6 + $0x1c8] sm:$0xff]  }
  0x37   :  { %v1178_v40 = vld [vmem:[#allocation3 + $0x40] ss:$16 sps:$4 sm:$0xff]   ;;  %v1184_v45 = vld [vmem:[#allocation3 + $0x44] ss:$16 sps:$4 sm:$0xff]   ;;  %v111_v46 = vrot.slane %v1176_v39, %v1361_v37  ;;  %v118_v51 = vrot.slane %v1183_v44, %v1361_v37  ;;  %v1192_v8 = vld [vmem:[#allocation6 + $0x108] sm:$0xff]  }
  0x38   :  { %1051 = vmatpush3.bf16.msra.mxu0 %v1156_v14  ;;  %v1180_v41 = vld [vmem:[#allocation3 + $0x60] ss:$16 sps:$4 sm:$0xff]   ;;  %v169_v47 = vrot.slane %v1178_v40, %v1361_v37  ;;  %v1185_v49 = vld [vmem:[#allocation3 + $0x64] ss:$16 sps:$4 sm:$0xff]   ;;  %v176_v52 = vrot.slane %v1184_v45, %v1361_v37  ;;  %v1193_v9 = vld [vmem:[#allocation6 + $0x188] sm:$0xff]  }
  0x39   :  { %1073 = vmatpush3.bf16.msra.mxu1 %v1157_v15  ;;  %1052 = vmatprep.subr.bf16.mxu0 %v1158_v16  ;;  %v183_v48 = vrot.slane %v1180_v41, %v1361_v37  ;;  %v120_v54 = vcombine.high %v97_v42, %v111_v46  ;;  %v190_v56 = vrot.slane %v1185_v49, %v1361_v37  ;;  %v1189_v2 = vld [vmem:[#allocation6 + $0x180] sm:$0xff]   ;;  %v1194_v10 = vld [vmem:[#allocation6 + $0x150] sm:$0xff]   ;;  %v1198_v14 = vld [vmem:[#allocation6 + $0x158] sm:$0xff]  }
  0x3a   :  { %1074 = vmatprep.subr.bf16.mxu1 %v1159_v17  ;;  %v119_v57 = vcombine.low %v97_v42, %v111_v46  ;;  %v122_v59 = vcombine.high %v104_v50, %v118_v51  ;;  %v121_v61 = vcombine.low %v104_v50, %v118_v51  ;;  %v1195_v11 = vld [vmem:[#allocation6 + $0x1d0] sm:$0xff]   ;;  %v1199_v15 = vld [vmem:[#allocation6 + $0x1d8] sm:$0xff]   ;;  %v1209_v25 = vld [vmem:[#allocation6 + $0x1a8] sm:$0xff]  }
  0x3b   :  { %v192_v55 = vcombine.high %v169_v47, %v183_v48  ;;  %v191_v60 = vcombine.low %v169_v47, %v183_v48  ;;  %v194_v0 = vcombine.high %v176_v52, %v190_v56  ;;  %v193_v1 = vcombine.low %v176_v52, %v190_v56  ;;  %v1196_v12 = vld [vmem:[#allocation6 + $0x110] sm:$0xff]   ;;  %v1200_v16 = vld [vmem:[#allocation6 + $0x118] sm:$0xff]  }
  0x3c   :  { %1053 = vmatpush3.bf16.msra.mxu0 %v1160_v18  ;;  %v1197_v13 = vld [vmem:[#allocation6 + $0x190] sm:$0xff]   ;;  %v1201_v17 = vld [vmem:[#allocation6 + $0x198] sm:$0xff]   ;;  %v1202_v18 = vld [vmem:[#allocation6 + $0x160] sm:$0xff]  }
  0x3d   :  { %1075 = vmatpush3.bf16.msra.mxu1 %v1161_v19  ;;  %1054 = vmatprep.subr.bf16.mxu0 %v1162_v20  ;;  %v248_v63 = vpack.c.bf16 %v192_v55, %v120_v54  ;;  %v247_v3 = vpack.c.bf16 %v191_v60, %v119_v57  ;;  %v250_v5 = vpack.c.bf16 %v194_v0, %v122_v59  ;;  %v1203_v19 = vld [vmem:[#allocation6 + $0x1e0] sm:$0xff]   ;;  %v1210_v26 = vld [vmem:[#allocation6 + $0x170] sm:$0xff]   ;;  %v1216_v32 = vld [vmem:[#allocation6 + $0x138] sm:$0xff]  }
  0x3e   :  { %1076 = vmatprep.subr.bf16.mxu1 %v1163_v21  ;;  %v249_v6 = vpack.c.bf16 %v193_v1, %v121_v61  ;;  %v1204_v20 = vld [vmem:[#allocation6 + $0x120] sm:$0xff]   ;;  %v1211_v27 = vld [vmem:[#allocation6 + $0x1f0] sm:$0xff]   ;;  %v1217_v33 = vld [vmem:[#allocation6 + $0x1b8] sm:$0xff]  }
  0x3f   :  { %799 = vmatprep.mubr.bf16.mxu0 %v248_v63  ;;  %840 = vmatprep.mubr.bf16.mxu1 %v250_v5  ;;  %v1205_v21 = vld [vmem:[#allocation6 + $0x1a0] sm:$0xff]   ;;  %v1224_v38 = vld [vmem:[#allocation3 + $0x68] ss:$16 sps:$4 sm:$0xff]   ;;  %v1226_v39 = vld [vmem:[#allocation3 + $0xc] ss:$16 sps:$4 sm:$0xff]  }
  0x40   :  { %1055 = vmatpush3.bf16.msra.mxu0 %v1164_v22  ;;  %v1206_v22 = vld [vmem:[#allocation6 + $0x168] sm:$0xff]   ;;  %v219_v46 = vrot.slane %v1224_v38, %v1361_v37  ;;  %v140_v47 = vrot.slane %v1226_v39, %v1361_v37 }
  0x41   :  { %1077 = vmatpush3.bf16.msra.mxu1 %v1165_v23  ;;  %1056 = vmatprep.subr.bf16.mxu0 %v1166_v24  ;;  %v1207_v23 = vld [vmem:[#allocation6 + $0x1e8] sm:$0xff]  }
  0x42   :  { %1078 = vmatprep.subr.bf16.mxu1 %v1167_v28  ;;  %v1208_v24 = vld [vmem:[#allocation6 + $0x128] sm:$0xff]   ;;  %v1212_v28 = vld [vmem:[#allocation6 + $0x130] sm:$0xff]  }
  0x43   :  { %v1227_v40 = vld [vmem:[#allocation3 + $0x2c] ss:$16 sps:$4 sm:$0xff]  }
  0x44   :  { %1057 = vmatpush3.bf16.msra.mxu0 %v1168_v29  ;;  %v1213_v29 = vld [vmem:[#allocation6 + $0x1b0] sm:$0xff]   ;;  %v1228_v44 = vld [vmem:[#allocation3 + $0x4c] ss:$16 sps:$4 sm:$0xff]   ;;  %v154_v48 = vrot.slane %v1227_v40, %v1361_v37 }
  0x45   :  { %1079 = vmatpush3.bf16.msra.mxu1 %v1169_v30  ;;  %1058 = vmatprep.subr.bf16.mxu0 %v1170_v31  ;;  %v1214_v30 = vld [vmem:[#allocation6 + $0x178] sm:$0xff]   ;;  %v212_v50 = vrot.slane %v1228_v44, %v1361_v37 }
  0x46   :  { %1080 = vmatprep.subr.bf16.mxu1 %v1171_v34  ;;  %v1215_v31 = vld [vmem:[#allocation6 + $0x1f8] sm:$0xff]   ;;  %v158_v54 = vcombine.high %v140_v47, %v154_v48  ;;  %v157_v56 = vcombine.low %v140_v47, %v154_v48 }
  0x47   :  { %v1218_v34 = vld [vmem:[#allocation3 + $0x8] ss:$16 sps:$4 sm:$0xff]   ;;  %v1229_v45 = vld [vmem:[#allocation3 + $0x6c] ss:$16 sps:$4 sm:$0xff]  }
  0x48   :  { %1059 = vmatpush3.bf16.msra.mxu0 %v1172_v35  ;;  %v1220_v35 = vld [vmem:[#allocation3 + $0x28] ss:$16 sps:$4 sm:$0xff]   ;;  %v133_v41 = vrot.slane %v1218_v34, %v1361_v37  ;;  %v226_v51 = vrot.slane %v1229_v45, %v1361_v37 }
  0x49   :  { %1081 = vmatpush3.bf16.msra.mxu1 %v1173_v36  ;;  %1088 = vmatprep.subr.bf16.mxu0 %v1186_v53  ;;  %v1222_v36 = vld [vmem:[#allocation3 + $0x48] ss:$16 sps:$4 sm:$0xff]   ;;  %v147_v42 = vrot.slane %v1220_v35, %v1361_v37 }
  0x4a   :  { %1110 = vmatprep.subr.bf16.mxu1 %v1187_v58  ;;  %v205_v43 = vrot.slane %v1222_v36, %v1361_v37  ;;  %v230_v57 = vcombine.high %v212_v50, %v226_v51  ;;  %v229_v58 = vcombine.low %v212_v50, %v226_v51 }
  0x4b   :  { %800 = vmatmul.mubr.bf16.vlgmr.msra.gmra.mrb[0].mxu0 %v247_v3  ;;  %v156_v49 = vcombine.high %v133_v41, %v147_v42  ;;  %v155_v52 = vcombine.low %v133_v41, %v147_v42 }
  0x4c   :  { %1089 = vmatpush3.bf16.msra.mxu0 %v1188_v62  ;;  %841 = vmatmul.mubr.bf16.vlgmr.msra.gmra.mrb[0].mxu1 %v249_v6  ;;  %v228_v53 = vcombine.high %v205_v43, %v219_v46  ;;  %v227_v55 = vcombine.low %v205_v43, %v219_v46  ;;  %v254_v61 = vpack.c.bf16 %v230_v57, %v158_v54 }
  0x4d   :  { %1090 = vmatprep.subr.bf16.mxu0 %v1190_v4  ;;  %1111 = vmatpush3.bf16.msra.mxu1 %v1189_v2  ;;  %v253_v62 = vpack.c.bf16 %v229_v58, %v157_v56 }
  0x4e   :  { %1112 = vmatprep.subr.bf16.mxu1 %v1191_v7  ;;  %v252_v59 = vpack.c.bf16 %v228_v53, %v156_v49  ;;  %v251_v60 = vpack.c.bf16 %v227_v55, %v155_v52  ;;  %922 = vmatprep.mubr.bf16.mxu1 %v254_v61 }
  0x50   :  { %1091 = vmatpush3.bf16.msra.mxu0 %v1192_v8  ;;  %881 = vmatprep.mubr.bf16.mxu0 %v252_v59 }
  0x51   :  { %1092 = vmatprep.subr.bf16.mxu0 %v1194_v10  ;;  %1113 = vmatpush3.bf16.msra.mxu1 %v1193_v9 }
  0x52   :  { %1114 = vmatprep.subr.bf16.mxu1 %v1195_v11 }
  0x54   :  { %1093 = vmatpush3.bf16.msra.mxu0 %v1196_v12 }
  0x55   :  { %1094 = vmatprep.subr.bf16.mxu0 %v1198_v14  ;;  %1115 = vmatpush3.bf16.msra.mxu1 %v1197_v13 }
  0x56   :  { %1116 = vmatprep.subr.bf16.mxu1 %v1199_v15 }
  0x58   :  { %1095 = vmatpush3.bf16.msra.mxu0 %v1200_v16 }
  0x59   :  { %1096 = vmatprep.subr.bf16.mxu0 %v1202_v18  ;;  %1117 = vmatpush3.bf16.msra.mxu1 %v1201_v17 }
  0x5a   :  { %1118 = vmatprep.subr.bf16.mxu1 %v1203_v19 }
  0x5c   :  { %1097 = vmatpush3.bf16.msra.mxu0 %v1204_v20 }
  0x5d   :  { %1098 = vmatprep.subr.bf16.mxu0 %v1206_v22  ;;  %1119 = vmatpush3.bf16.msra.mxu1 %v1205_v21 }
  0x5e   :  { %1120 = vmatprep.subr.bf16.mxu1 %v1207_v23 }
  0x60   :  { %1099 = vmatpush3.bf16.msra.mxu0 %v1208_v24  ;;  %v1042_v24 = vld [vmem:[%s1399_s2] ss:$0 sm:$0xff] }
  0x61   :  { %1100 = vmatprep.subr.bf16.mxu0 %v1210_v26  ;;  %1121 = vmatpush3.bf16.msra.mxu1 %v1209_v25 }
  0x62   :  { %1122 = vmatprep.subr.bf16.mxu1 %v1211_v27 }
  0x64   :  { %1101 = vmatpush3.bf16.msra.mxu0 %v1212_v28  ;;  %v1043_v28 = vld [vmem:[%s1400_s3] ss:$0 sm:$0xff] }
  0x65   :  { %1102 = vmatprep.subr.bf16.mxu0 %v1214_v30  ;;  %1123 = vmatpush3.bf16.msra.mxu1 %v1213_v29 }
  0x66   :  { %1124 = vmatprep.subr.bf16.mxu1 %v1215_v31 }
  0x68   :  { %1103 = vmatpush3.bf16.msra.mxu0 %v1216_v32 }
  0x69   :  { %1125 = vmatpush3.bf16.msra.mxu1 %v1217_v33 }
  0x6b   :  { %882 = vmatmul.mubr.bf16.vlgmr.msra.gmra.mrb[4].mxu0 %v251_v60 }
  0x6c   :  { %923 = vmatmul.mubr.bf16.vlgmr.msra.gmra.mrb[4].mxu1 %v253_v62 }
 0x11e   :  { %v1060_v63 = vpop.f32.mrb[0].mxu0 }
 0x11f   :  { %v1061_v0 = vpop.f32.mrb[1].mxu0  ;;  %v1082_v1 = vpop.f32.mrb[0].mxu1 }
 0x120   :  { %v1062_v2 = vadd.f32 %v1061_v0, %v1060_v63  ;;  %v1063_v37 = vpop.f32.mrb[2].mxu0  ;;  %v1083_v3 = vpop.f32.mrb[1].mxu1 }
 0x121   :  { %v1064_v4 = vpop.f32.mrb[3].mxu0  ;;  %v1084_v5 = vadd.f32 %v1083_v3, %v1082_v1  ;;  %v1085_v6 = vpop.f32.mrb[2].mxu1 }
 0x122   :  { %v1065_v7 = vadd.f32 %v1064_v4, %v1063_v37  ;;  %v1086_v8 = vpop.f32.mrb[3].mxu1 }
 0x123   :  { %v843_v9 = vadd.f32 %v1084_v5, %v1062_v2  ;;  %v1087_v10 = vadd.f32 %v1086_v8, %v1085_v6 }
 0x125   :  { %v846_v11 = vadd.f32 %v1087_v10, %v1065_v7 }
 0x13e   :  { %v1104_v12 = vpop.f32.mrb[4].mxu0 }
 0x13f   :  { %v1126_v13 = vpop.f32.mrb[4].mxu1  ;;  %v1105_v14 = vpop.f32.mrb[5].mxu0 }
 0x140   :  { %v1106_v15 = vadd.f32 %v1105_v14, %v1104_v12  ;;  %v1127_v16 = vpop.f32.mrb[5].mxu1  ;;  %v1107_v17 = vpop.f32.mrb[6].mxu0 }
 0x141   :  { %v1128_v18 = vadd.f32 %v1127_v16, %v1126_v13  ;;  %v1129_v19 = vpop.f32.mrb[6].mxu1  ;;  %v1108_v20 = vpop.f32.mrb[7].mxu0 }
 0x142   :  { %v884_v21 = vadd.f32 %v1106_v15, %v843_v9  ;;  %v1109_v22 = vadd.f32 %v1108_v20, %v1107_v17  ;;  %v1130_v23 = vpop.f32.mrb[7].mxu1 }
 0x143   :  { %v1131_v25 = vadd.f32 %v1130_v23, %v1129_v19 }
 0x144   :  { %v925_v26 = vadd.f32 %v1128_v18, %v884_v21  ;;  %v887_v27 = vadd.f32 %v1109_v22, %v846_v11 }
 0x146   :  { %v947_v29 = vadd.f32 %v1042_v24, %v925_v26  ;;  %v928_v30 = vadd.f32 %v1131_v25, %v887_v27 }
 0x148   :  { %v956_v31 = vmul.f32 %v1043_v28, %v947_v29  ;;  %v948_v32 = vadd.f32 %v1042_v24, %v928_v30 }
 0x14a   :  { %958 = vst [vmem:[#allocation8] sm:$0xff] %v956_v31  ;;  %v957_v33 = vmul.f32 %v1043_v28, %v948_v32 }
 0x14c   :  { %959 = vst [vmem:[#allocation8 + $0x8] sm:$0xff] %v957_v33 }
 0x14d   :  { %964 = vsyncadd [#allocation5], 224  ;;  %s1309_s20 = smov [#allocation8]  }
 0x14e   :  { %s965_s21 = sshll.u32 %s1309_s20, 4  ;;  %s966_s21 = int_to_ptr.vmem [resolvable:$true] %s965_s21 }
 0x14f   :  { %s1274_s22 = scalar_lea.vmem %s966_s21, 32  ;;  %s1278_s2 = scalar_lea.vmem %s966_s21, 256 }
 0x150   :  { %p1275_p2 = scmp.ne.s32.totalorder %s966_s21, %s1274_s22  ;;  %p1279_p3 = scmp.lt.s32.totalorder %s966_s21, %s966_s21 }
 0x151   :  { %p1280_p4 = scmp.lt.s32.totalorder %s1278_s2, %s1274_s22 }
 0x153   :  { %p1281_p5 = por %p1280_p4, %p1279_p3 }
 0x155   :  { %p1282_p6 = pnand %p1281_p5, %p1275_p2 }
 0x157   :  { %1285 = shalt.err (!%p1282_p6)
}
 0x158   :  { %s1286_s24 = scalar_lea.hbm %s1401_s4, 32 }
 0x159   :  { %p1287_p7 = scmp.ne.s32.totalorder %s1401_s4, %s1286_s24  ;;  %p1290_p8 = scmp.lt.u32.totalorder %s1286_s24, %s1401_s4 }
 0x15b   :  { %p1292_p9 = pnand %p1290_p8, %p1287_p7 }
 0x15d   :  { %1295 = shalt.err (!%p1292_p9)
}
 0x15e   :  { %s1310_s29 = smov 32   ;;  %s1311_s30 = smov 2  }
 0x15f   :  { %971 = dma.vmem_to_hbm [thread:$0]  %s966_s21, 32, %s1401_s4, [#allocation5], %s1310_s29, %s1310_s29, %s1311_s30  }
 0x160   :  { %1300 = dma.done.wait [#allocation5], 256  }
 0x161   :  { %1301 = vsyncadd [#allocation5], 4294967040 }
 0x162   :  { %975 = vsyncpa [#allocation4], 1 }
 0x163   :  { %976 = vsyncpa [#allocation7], 1 }
 0x164   :  { %977 = vsyncpa [#allocation5], 1 }

</bundles_post_ra>
